<compile_context>
chip_gen: v7x
topology: tpu7x:2x2x1
jax: 0.10.0
libtpu: 0.0.40
codegen_flags: <defaults>
</compile_context>

<pallas_src>
import functools
import math

import jax
import jax.numpy as jnp
from jax.experimental import pallas as pl
from jax.experimental.pallas import tpu as pltpu

LANE = 128


def _round_up(v, m):
    return ((v + m - 1) // m) * m


def make_mlp_kernel(layer_dims, bias_row, padded_width):
    """Fused MLP kernel.

    layer_dims: static tuple of (in_features, out_features) per Linear layer,
    the last entry being the output layer (no ReLU, softmax applied after).

    Refs:
      x_ref   : (bm, in0) bf16
      p_ref   : (n_layers, rows_pad, padded_width) bf16 packed
                [W_i in rows 0..in_i-1, bias at fixed row `bias_row`]
      out_ref : (bm, out_last) f32
    """
    n_layers = len(layer_dims)
    din0 = layer_dims[0][0]
    out_dim = layer_dims[-1][1]

    def kernel(x_ref, p_ref, out_ref):
        # Layer 0: x at its natural width; weight cols are zero-padded to
        # `padded_width` lanes so everything downstream is a full-width vreg.
        h = jnp.dot(x_ref[...], p_ref[0, 0:din0, :],
                    preferred_element_type=jnp.float32)
        h = h + p_ref[0, bias_row:bias_row + 1, :].astype(jnp.float32)
        if n_layers > 1:
            h = jnp.maximum(h, 0.0)

        # Remaining layers: uniform (bm, padded_width) activations.  Zero
        # weight-row/col padding and zero bias padding are inert through
        # Linear+ReLU, so no per-layer lane narrowing is needed.
        for i in range(1, n_layers):
            h = jnp.dot(h.astype(jnp.bfloat16), p_ref[i, 0:padded_width, :],
                        preferred_element_type=jnp.float32)
            h = h + p_ref[i, bias_row:bias_row + 1, :].astype(jnp.float32)
            if i < n_layers - 1:                              # hidden: ReLU
                h = jnp.maximum(h, 0.0)

        # Numerically-stable softmax over the TRUE output columns only:
        # padded logit columns are masked to -inf (exp -> 0 in the denom).
        lane = jax.lax.broadcasted_iota(jnp.int32, h.shape, 1)
        logits = jnp.where(lane < out_dim, h, -jnp.inf)
        m = jnp.max(logits, axis=1, keepdims=True)
        e = jnp.exp(logits - m)
        denom = jnp.sum(e, axis=1, keepdims=True)
        probs = e * pl.reciprocal(denom, approx=True)
        out_ref[...] = probs[:, 0:out_dim].astype(out_ref.dtype)

    return kernel


def init_mlp_params(key, input_dim, layer_sizes, output_dim):
    """Deterministic PyTorch-style init: U(-1/sqrt(fan_in), 1/sqrt(fan_in))."""
    params = []
    prev = input_dim
    dims = list(layer_sizes) + [output_dim]
    for out_dim in dims:
        key, kw, kb = jax.random.split(key, 3)
        bound = 1.0 / math.sqrt(prev)
        # Stored as (in, out) — transpose of PyTorch's (out, in).
        w = jax.random.uniform(kw, (prev, out_dim), jnp.float32, -bound, bound)
        b = jax.random.uniform(kb, (1, out_dim), jnp.float32, -bound, bound)
        params.append((w, b))
        prev = out_dim
    return params


def pack_params(params, dtype=jnp.bfloat16):
    """Pack all (W, b) pairs into one (n_layers, rows_pad, cols_pad) buffer.

    cols_pad is the lane dim padded up to a multiple of 128 so all vector ops
    are unmasked; the weight-row region covers both the raw input width (for
    layer 0) and the padded activation width feeding every later layer.  The
    bias of every layer lives at the fixed row `bias_row`.  Padding is zero.
    Returns (buffer, bias_row, cols_pad).
    """
    din0 = params[0][0].shape[0]
    max_out = max(w.shape[1] for w, _ in params)
    cols = _round_up(max_out, LANE)
    w_rows = max(_round_up(din0, 8), cols)
    bias_row = w_rows
    rows = _round_up(w_rows + 1, 8)
    buf = jnp.zeros((len(params), rows, cols), dtype)
    for i, (w, b) in enumerate(params):
        din, dout = w.shape
        buf = buf.at[i, 0:din, 0:dout].set(w.astype(dtype))
        buf = buf.at[i, bias_row, 0:dout].set(b.reshape(-1).astype(dtype))
    return buf, bias_row, cols


@functools.partial(jax.jit,
                   static_argnames=("layer_dims", "bias_row", "padded_width"))
def mlp_forward(x, packed, layer_dims, bias_row, padded_width):
    batch, input_dim = x.shape
    output_dim = layer_dims[-1][1]

    # Stream x in bf16: the kernel feeds bf16 into the MXU anyway, so this is
    # numerically identical while halving the dominant HBM stream.
    x_bf16 = x.astype(jnp.bfloat16)

    # Batch tile: one block for small batches; otherwise 16-row-aligned tiles
    # up to 512 rows, with grid >= 2 so v7x's two TensorCores both engage.
    if batch <= 128:
        bm = batch
    else:
        bm = min(512, _round_up(pl.cdiv(batch, 2), 16))
    grid_m = pl.cdiv(batch, bm)

    kernel = make_mlp_kernel(layer_dims, bias_row, padded_width)

    flops = 2 * batch * sum(din * dout for din, dout in layer_dims)
    bytes_accessed = (x_bf16.size * 2 + packed.size * 2
                      + batch * output_dim * 4)
    cost = pl.CostEstimate(flops=flops,
                           transcendentals=batch * (output_dim + 1),
                           bytes_accessed=bytes_accessed)

    return pl.pallas_call(
        kernel,
        out_shape=jax.ShapeDtypeStruct((batch, output_dim), jnp.float32),
        grid=(grid_m,),
        in_specs=[
            pl.BlockSpec((bm, input_dim), lambda i: (i, 0)),
            # Packed params: constant index_map -> loaded once, VMEM-resident.
            pl.BlockSpec(packed.shape, lambda i: (0, 0, 0)),
        ],
        out_specs=pl.BlockSpec((bm, output_dim), lambda i: (i, 0)),
        compiler_params=pltpu.CompilerParams(
            dimension_semantics=("parallel",),
        ),
        cost_estimate=cost,
    )(x_bf16, packed)


def reference_forward_f32(x, params):
    """Pure-f32 reference (module semantics, eval-mode Dropout)."""
    h = x.astype(jnp.float32)
    for w, b in params[:-1]:
        h = jnp.maximum(h @ w + b, 0.0)
    wo, bo = params[-1]
    logits = h @ wo + bo
    return jax.nn.softmax(logits, axis=1)


def reference_forward_matched(x, params):
    """Reference matching kernel precision (bf16 MXU inputs/bias, f32 accum)."""
    h = x.astype(jnp.float32)
    n = len(params)
    for i, (w, b) in enumerate(params):
        h = jnp.dot(h.astype(jnp.bfloat16), w.astype(jnp.bfloat16),
                    preferred_element_type=jnp.float32)
        h = h + b.astype(jnp.bfloat16).astype(jnp.float32)
        if i < n - 1:
            h = jnp.maximum(h, 0.0)
    return jax.nn.softmax(h, axis=1)


if __name__ == "__main__":
    # Module config: input_shape=(batch, 32), layer_sizes=[64, 32],
    # output_shape forced to 2 in __init__, drop_input=0.1,
    # drop_hidden=[0.2, 0.2] (all identity at inference).
    batch = 8
    input_dim = 32
    layer_sizes = [64, 32]
    output_dim = 2

    key = jax.random.PRNGKey(0)
    key, kx = jax.random.split(key)
    x = jax.random.normal(kx, (batch, input_dim), jnp.float32)

    params = init_mlp_params(key, input_dim, layer_sizes, output_dim)
    packed, bias_row, padded_width = pack_params(params, dtype=jnp.bfloat16)
    layer_dims = tuple((w.shape[0], w.shape[1]) for w, _ in params)

    out = mlp_forward(x, packed, layer_dims, bias_row, padded_width)
    out = jax.block_until_ready(out)

    assert out.shape == (batch, output_dim)

    ref_matched = reference_forward_matched(x, params)
    ref_f32 = reference_forward_f32(x, params)

    # Tight check vs. precision-matched reference (approx reciprocal allows a
    # small slack), loose sanity check vs. pure-f32 semantics.
    assert jnp.allclose(out, ref_matched, atol=5e-3, rtol=1e-2), \
        "mismatch vs precision-matched reference"
    assert jnp.allclose(out, ref_f32, atol=5e-2), "mismatch vs f32 reference"
    # Softmax rows must sum to ~1 (approx reciprocal => small slack).
    assert jnp.allclose(jnp.sum(out, axis=1), jnp.ones((batch,)), atol=1e-2)

    print("KERNEL_OK")
</pallas_src>

<mosaic_0001>
module attributes {stable_mosaic.version = 11 : i64} {
  func.func @kernel(%arg0: i32, %arg1: memref<8x32xbf16, #tpu.memory_space<vmem>>, %arg2: memref<3x136x128xbf16, #tpu.memory_space<vmem>>, %arg3: memref<8x2xf32, #tpu.memory_space<vmem>>) attributes {dimension_semantics = [#tpu.dimension_semantics<parallel>], iteration_bounds = array<i64: 1>, scalar_prefetch = 0 : i64, scratch_operands = 0 : i64, tpu.core_type = #tpu.core_type<tc>, window_params = [{transform_indices = @transform_0, window_bounds = array<i64: 8, 32>}, {pipeline_mode = #tpu.pipeline_mode<synchronous>, transform_indices = @transform_1, window_bounds = array<i64: 3, 136, 128>}, {transform_indices = @transform_2, window_bounds = array<i64: 8, 2>}]} {
    %c0 = arith.constant 0 : index
    %c0_0 = arith.constant 0 : index
    %0 = vector.load %arg1[%c0, %c0_0] : memref<8x32xbf16, #tpu.memory_space<vmem>>, vector<8x32xbf16>
    %c0_1 = arith.constant 0 : index
    %c0_2 = arith.constant 0 : index
    %c0_3 = arith.constant 0 : index
    %1 = vector.load %arg2[%c0_1, %c0_2, %c0_3] : memref<3x136x128xbf16, #tpu.memory_space<vmem>>, vector<1x32x128xbf16>
    %2 = vector.shape_cast %1 : vector<1x32x128xbf16> to vector<32x128xbf16>
    %cst = arith.constant dense<0.000000e+00> : vector<8x128xf32>
    %3 = tpu.matmul %0, %2, %cst {dimension_numbers = #tpu.dot_dimension_numbers<[1], [0], [0], [1], [0, 0, 1, 1], [], []>} : vector<8x32xbf16>, vector<32x128xbf16>, vector<8x128xf32> -> vector<8x128xf32>
    %c0_4 = arith.constant 0 : index
    %c128 = arith.constant 128 : index
    %c0_5 = arith.constant 0 : index
    %4 = vector.load %arg2[%c0_4, %c128, %c0_5] : memref<3x136x128xbf16, #tpu.memory_space<vmem>>, vector<1x1x128xbf16>
    %5 = vector.shape_cast %4 : vector<1x1x128xbf16> to vector<1x128xbf16>
    %6 = arith.extf %5 : vector<1x128xbf16> to vector<1x128xf32>
    %7 = vector.broadcast %6 : vector<1x128xf32> to vector<8x128xf32>
    %8 = arith.addf %3, %7 : vector<8x128xf32>
    %cst_6 = arith.constant 0.000000e+00 : f32
    %9 = vector.broadcast %cst_6 : f32 to vector<8x128xf32>
    %10 = arith.maximumf %8, %9 : vector<8x128xf32>
    %11 = arith.truncf %10 : vector<8x128xf32> to vector<8x128xbf16>
    %c1 = arith.constant 1 : index
    %c0_7 = arith.constant 0 : index
    %c0_8 = arith.constant 0 : index
    %12 = vector.load %arg2[%c1, %c0_7, %c0_8] : memref<3x136x128xbf16, #tpu.memory_space<vmem>>, vector<1x128x128xbf16>
    %13 = vector.shape_cast %12 : vector<1x128x128xbf16> to vector<128x128xbf16>
    %cst_9 = arith.constant dense<0.000000e+00> : vector<8x128xf32>
    %14 = tpu.matmul %11, %13, %cst_9 {dimension_numbers = #tpu.dot_dimension_numbers<[1], [0], [0], [1], [0, 0, 1, 1], [], []>} : vector<8x128xbf16>, vector<128x128xbf16>, vector<8x128xf32> -> vector<8x128xf32>
    %c1_10 = arith.constant 1 : index
    %c128_11 = arith.constant 128 : index
    %c0_12 = arith.constant 0 : index
    %15 = vector.load %arg2[%c1_10, %c128_11, %c0_12] : memref<3x136x128xbf16, #tpu.memory_space<vmem>>, vector<1x1x128xbf16>
    %16 = vector.shape_cast %15 : vector<1x1x128xbf16> to vector<1x128xbf16>
    %17 = arith.extf %16 : vector<1x128xbf16> to vector<1x128xf32>
    %18 = vector.broadcast %17 : vector<1x128xf32> to vector<8x128xf32>
    %19 = arith.addf %14, %18 : vector<8x128xf32>
    %cst_13 = arith.constant 0.000000e+00 : f32
    %20 = vector.broadcast %cst_13 : f32 to vector<8x128xf32>
    %21 = arith.maximumf %19, %20 : vector<8x128xf32>
    %22 = arith.truncf %21 : vector<8x128xf32> to vector<8x128xbf16>
    %c2 = arith.constant 2 : index
    %c0_14 = arith.constant 0 : index
    %c0_15 = arith.constant 0 : index
    %23 = vector.load %arg2[%c2, %c0_14, %c0_15] : memref<3x136x128xbf16, #tpu.memory_space<vmem>>, vector<1x128x128xbf16>
    %24 = vector.shape_cast %23 : vector<1x128x128xbf16> to vector<128x128xbf16>
    %cst_16 = arith.constant dense<0.000000e+00> : vector<8x128xf32>
    %25 = tpu.matmul %22, %24, %cst_16 {dimension_numbers = #tpu.dot_dimension_numbers<[1], [0], [0], [1], [0, 0, 1, 1], [], []>} : vector<8x128xbf16>, vector<128x128xbf16>, vector<8x128xf32> -> vector<8x128xf32>
    %c2_17 = arith.constant 2 : index
    %c128_18 = arith.constant 128 : index
    %c0_19 = arith.constant 0 : index
    %26 = vector.load %arg2[%c2_17, %c128_18, %c0_19] : memref<3x136x128xbf16, #tpu.memory_space<vmem>>, vector<1x1x128xbf16>
    %27 = vector.shape_cast %26 : vector<1x1x128xbf16> to vector<1x128xbf16>
    %28 = arith.extf %27 : vector<1x128xbf16> to vector<1x128xf32>
    %29 = vector.broadcast %28 : vector<1x128xf32> to vector<8x128xf32>
    %30 = arith.addf %25, %29 : vector<8x128xf32>
    %31 = tpu.iota {dimensions = array<i32: 1>} : vector<8x128xi32>
    %c2_i32 = arith.constant 2 : i32
    %32 = vector.broadcast %c2_i32 : i32 to vector<8x128xi32>
    %33 = arith.cmpi slt, %31, %32 : vector<8x128xi32>
    %cst_20 = arith.constant 0xFF800000 : f32
    %34 = vector.broadcast %cst_20 : f32 to vector<8x128xf32>
    %35 = arith.select %33, %30, %34 : vector<8x128xi1>, vector<8x128xf32>
    %cst_21 = arith.constant dense<0xFF800000> : vector<8xf32>
    %36 = vector.multi_reduction <maximumf>, %35, %cst_21 [1] : vector<8x128xf32> to vector<8xf32>
    %37 = vector.shape_cast %36 : vector<8xf32> to vector<8x1xf32>
    %38 = vector.broadcast %37 : vector<8x1xf32> to vector<8x128xf32>
    %39 = arith.subf %35, %38 : vector<8x128xf32>
    %40 = math.exp %39 : vector<8x128xf32>
    %cst_22 = arith.constant dense<0.000000e+00> : vector<8xf32>
    %41 = vector.multi_reduction <add>, %40, %cst_22 [1] : vector<8x128xf32> to vector<8xf32>
    %42 = vector.shape_cast %41 : vector<8xf32> to vector<8x1xf32>
    %43 = tpu.reciprocal %42 {approx = true} : vector<8x1xf32> -> vector<8x1xf32>
    %44 = vector.broadcast %43 : vector<8x1xf32> to vector<8x128xf32>
    %45 = arith.mulf %40, %44 : vector<8x128xf32>
    %46 = vector.extract_strided_slice %45 {offsets = [0, 0], sizes = [8, 2], strides = [1, 1]} : vector<8x128xf32> to vector<8x2xf32>
    %c0_23 = arith.constant 0 : index
    %c0_24 = arith.constant 0 : index
    %47 = vector.load %arg3[%c0_23, %c0_24] : memref<8x2xf32, #tpu.memory_space<vmem>>, vector<8x2xf32>
    tpu.vector_store %arg3[%c0_23, %c0_24], %46 {strides = array<i32>} : memref<8x2xf32, #tpu.memory_space<vmem>>, vector<8x2xf32>,
    return
  }
  func.func @transform_0(%arg0: i32) -> (i32, i32) {
    %c0_i32 = arith.constant 0 : i32
    %c0_i32_0 = arith.constant 0 : i32
    return %arg0, %c0_i32 : i32, i32
  }
  func.func @transform_1(%arg0: i32) -> (i32, i32, i32) {
    %c0_i32 = arith.constant 0 : i32
    %c0_i32_0 = arith.constant 0 : i32
    %c0_i32_1 = arith.constant 0 : i32
    %c0_i32_2 = arith.constant 0 : i32
    return %c0_i32, %c0_i32_0, %c0_i32_1 : i32, i32, i32
  }
  func.func @transform_2(%arg0: i32) -> (i32, i32) {
    %c0_i32 = arith.constant 0 : i32
    %c0_i32_0 = arith.constant 0 : i32
    return %arg0, %c0_i32 : i32, i32
  }
}

</mosaic_0001>

<bundles_post_ra>
// kernel: mlp_forward.1
= control target key start
LH: loop header
LB: loop body
LE: loop exit
PB: predicated region body
PF: predicated region fallthrough
CT: control target
= control target key end

     0   :  { %7 = vsyncpa [#allocation3], 0  ;;  %s478_s9 = smov [#allocation2]   ;;  %s540_s0 = inlined_call_operand.vmem [shape: bf16[8,32], index: 0, kind: input, shape index: {}]   ;;  %s541_s1 = inlined_call_operand.hbm [shape: bf16[3,136,128], index: 1, kind: input, shape index: {}]   ;;  %s542_s2 = inlined_call_operand.vmem [shape: f32[8,2], index: 2, kind: output, shape index: {}]  }
   0x1   :  { %s15_s10 = sshll.u32 %s478_s9, 4  ;;  %s454_s13 = scalar_lea.hbm %s541_s1, 3264  ;;  %s16_s10 = int_to_ptr.vmem [resolvable:$true] %s15_s10 }
   0x2   :  { %p455_p0 = scmp.ne.s32.totalorder %s541_s1, %s454_s13  ;;  %p458_p1 = scmp.lt.u32.totalorder %s454_s13, %s541_s1 }
   0x4   :  { %p460_p2 = pnand %p458_p1, %p455_p0 }
   0x6   :  { %463 = shalt.err (!%p460_p2)
}
   0x7   :  { %s464_s18 = scalar_lea.vmem %s16_s10, 3264  ;;  %p469_p4 = scmp.lt.s32.totalorder %s16_s10, %s16_s10 }
   0x8   :  { %p465_p3 = scmp.ne.s32.totalorder %s16_s10, %s464_s18  ;;  %p470_p5 = scmp.lt.s32.totalorder %s464_s18, %s464_s18 }
   0xa   :  { %p471_p6 = por %p470_p5, %p469_p4 }
   0xc   :  { %p472_p7 = pnand %p471_p6, %p465_p3 }
   0xe   :  { %475 = shalt.err (!%p472_p7)
}
   0xf   :  { %s479_s19 = smov 64   ;;  %s480_s20 = smov 4  }
  0x10   :  { %21 = dma.hbm_to_vmem [thread:$0]  %s541_s1, 3264, %s16_s10, [#allocation3], %s479_s19, %s479_s19, %s480_s20  }
  0x11   :  { %476 = dma.done.wait [#allocation3], 3264  }
  0x12   :  { %477 = vsyncadd [#allocation3], 4294964032  ;;  %v481_v0 = vmov 0.0   ;;  %vm482_vm0 = vmmov 0   ;;  %v432_v1 = vld [vmem:[#allocation2] sm:$0xff]   ;;  %v433_v2 = vld [vmem:[#allocation2 + $0x8] sm:$0xff]   ;;  %v33_v18 = vlaneseq }
  0x13   :  { %379 = vmatprep.subr.bf16.mxu0 %v481_v0  ;;  %383 = vmatprep.mubr.msk.bf16.mxu0 %vm482_vm0, %v481_v0  ;;  %v434_v3 = vld [vmem:[#allocation2 + $0x44] sm:$0xff]   ;;  %vm49_vm1 = vcmask 261120   ;;  %v435_v4 = vld [vmem:[#allocation2 + $0x4c] sm:$0xff]   ;;  %v26_v5 = vld [vmem:[%s540_s0] sm:$0xf]  ;;  %vm332_vm3 = vcmask 15360  }
  0x14   :  { %387 = vmatprep.subr.bf16.mxu1 %v481_v0  ;;  %403 = vmatprep.mubr.msk.bf16.mxu1 %vm482_vm0, %v481_v0  ;;  %v436_v6 = vld [vmem:[#allocation2 + $0x54] sm:$0xff]   ;;  %v437_v7 = vld [vmem:[#allocation2 + $0x5c] sm:$0xff]   ;;  %v438_v8 = vld [vmem:[#allocation2 + $0x64] sm:$0xff]   ;;  %v34_v19 = vshrl.u32 %v33_v18, 7  ;;  %v320_v45 = vand.u32 127, %v33_v18 }
  0x15   :  { %380 = vmatpush3.bf16.msra.mxu0 %v432_v1  ;;  %388 = vmatpush3.bf16.msra.mxu1 %v434_v3  ;;  %v439_v9 = vld [vmem:[#allocation2 + $0x6c] sm:$0xff]   ;;  %v440_v10 = vld [vmem:[#allocation2 + $0x74] sm:$0xff]   ;;  %v441_v11 = vld [vmem:[#allocation2 + $0x7c] sm:$0xff]  }
  0x16   :  { %381 = vmatprep.subr.bf16.mxu0 %v481_v0  ;;  %389 = vmatprep.subr.bf16.mxu1 %v481_v0  ;;  %v442_v12 = vld [vmem:[#allocation2 + $0x88] sm:$0xff]   ;;  %v443_v13 = vld [vmem:[#allocation2 + $0x90] sm:$0xff]   ;;  %v444_v14 = vld [vmem:[#allocation2 + $0x98] sm:$0xff]   ;;  %v35_v22 = vsub.s32 0, %v34_v19  ;;  %vm321_vm2 = vcmp.lt.s32.totalorder %v320_v45, 2 }
  0x17   :  { %v445_v15 = vld [vmem:[#allocation2 + $0xa0] sm:$0xff]   ;;  %v446_v16 = vld [vmem:[#allocation2 + $0xa8] sm:$0xff]   ;;  %v447_v17 = vld [vmem:[#allocation2 + $0xb0] sm:$0xff]  }
  0x18   :  { %v31_v20 = vld [vmem:[#allocation2 + $0x40] sm:$0x1]  ;;  %v448_v31 = vld [vmem:[#allocation2 + $0xb8] sm:$0xff]   ;;  %v112_v33 = vld [vmem:[#allocation2 + $0x84] sm:$0x1] }
  0x19   :  { %382 = vmatpush3.bf16.msra.mxu0 %v433_v2  ;;  %390 = vmatpush3.bf16.msra.mxu1 %v435_v4  ;;  %v32_v21 = vunpack.c.l.bf16 %v31_v20  ;;  %v449_v32 = vld [vmem:[#allocation2 + $0xc0] sm:$0xff]   ;;  %v113_v34 = vunpack.c.l.bf16 %v112_v33  ;;  %v225_v43 = vld [vmem:[#allocation2 + $0xc8] sm:$0x1] }
  0x1a   :  { %407 = vmatprep.subr.bf16.mxu0 %v481_v0  ;;  %391 = vmatprep.subr.bf16.mxu1 %v481_v0  ;;  %v226_v44 = vunpack.c.l.bf16 %v225_v43 }
  0x1b   :  { %v36_v23 = vrot.slane %v32_v21, %v35_v22  ;;  %v117_v35 = vrot.slane %v113_v34, %v35_v22 }
  0x1c   :  { %384 = vmatmul.mubr.msk.bf16.vlgmr.msra.gmra.mrb[0].mxu0 %vm49_vm1, %v26_v5  ;;  %v230_v46 = vrot.slane %v226_v44, %v35_v22 }
  0x1d   :  { %423 = vmatprep.mubr.msk.bf16.mxu0 %vm482_vm0, %v481_v0  ;;  %392 = vmatpush3.bf16.msra.mxu1 %v436_v6 }
  0x1e   :  { %393 = vmatprep.subr.bf16.mxu1 %v481_v0  ;;  %408 = vmatpush3.bf16.msra.mxu0 %v442_v12 }
  0x1f   :  { %409 = vmatprep.subr.bf16.mxu0 %v481_v0 }
  0x21   :  { %394 = vmatpush3.bf16.msra.mxu1 %v437_v7 }
  0x22   :  { %395 = vmatprep.subr.bf16.mxu1 %v481_v0  ;;  %410 = vmatpush3.bf16.msra.mxu0 %v443_v13 }
  0x23   :  { %411 = vmatprep.subr.bf16.mxu0 %v481_v0 }
  0x25   :  { %396 = vmatpush3.bf16.msra.mxu1 %v438_v8 }
  0x26   :  { %397 = vmatprep.subr.bf16.mxu1 %v481_v0  ;;  %412 = vmatpush3.bf16.msra.mxu0 %v444_v14 }
  0x27   :  { %413 = vmatprep.subr.bf16.mxu0 %v481_v0 }
  0x29   :  { %398 = vmatpush3.bf16.msra.mxu1 %v439_v9 }
  0x2a   :  { %399 = vmatprep.subr.bf16.mxu1 %v481_v0  ;;  %414 = vmatpush3.bf16.msra.mxu0 %v445_v15 }
  0x2b   :  { %415 = vmatprep.subr.bf16.mxu0 %v481_v0 }
  0x2d   :  { %400 = vmatpush3.bf16.msra.mxu1 %v440_v10 }
  0x2e   :  { %401 = vmatprep.subr.bf16.mxu1 %v481_v0  ;;  %416 = vmatpush3.bf16.msra.mxu0 %v446_v16 }
  0x2f   :  { %417 = vmatprep.subr.bf16.mxu0 %v481_v0 }
  0x31   :  { %402 = vmatpush3.bf16.msra.mxu1 %v441_v11 }
  0x32   :  { %418 = vmatpush3.bf16.msra.mxu0 %v447_v17 }
  0x33   :  { %419 = vmatprep.subr.bf16.mxu0 %v481_v0 }
  0x36   :  { %420 = vmatpush3.bf16.msra.mxu0 %v448_v31 }
  0x37   :  { %421 = vmatprep.subr.bf16.mxu0 %v481_v0 }
  0x3a   :  { %422 = vmatpush3.bf16.msra.mxu0 %v449_v32 }
  0xef   :  { %v87_v24 = vpop.f32.mrb[0].mxu0 }
  0xf0   :  { %v88_v25 = vadd.f32 %v87_v24, %v36_v23  ;;  %v385_v26 = vpop.f32.mrb[1].mxu0 }
  0xf1   :  { %v90_v27 = vpop.f32.mrb[2].mxu0 }
  0xf2   :  { %v93_v28 = vmax.f32 %v88_v25, 0.0  ;;  %v386_v29 = vpop.f32.mrb[3].mxu0 }
  0xf4   :  { %v94_v30 = vpack.c.bf16 %v93_v28, %v93_v28 }
  0xf6   :  { %404 = vmatmul.mubr.bf16.vlgmr.msra.gmra.mrb[0].mxu1 %v94_v30 }
 0x1c9   :  { %v200_v36 = vpop.f32.mrb[0].mxu1 }
 0x1ca   :  { %v201_v37 = vadd.f32 %v200_v36, %v117_v35  ;;  %v405_v38 = vpop.f32.mrb[1].mxu1 }
 0x1cb   :  { %v203_v39 = vpop.f32.mrb[2].mxu1 }
 0x1cc   :  { %v206_v40 = vmax.f32 %v201_v37, 0.0  ;;  %v406_v41 = vpop.f32.mrb[3].mxu1 }
 0x1ce   :  { %v207_v42 = vpack.c.bf16 %v206_v40, %v206_v40 }
 0x1d0   :  { %424 = vmatmul.mubr.bf16.vlgmr.msra.gmra.mrb[4].mxu0 %v207_v42 }
 0x2a3   :  { %v313_v47 = vpop.f32.mrb[4].mxu0 }
 0x2a4   :  { %v314_v48 = vadd.f32 %v313_v47, %v230_v46  ;;  %v425_v49 = vpop.f32.mrb[5].mxu0 }
 0x2a5   :  { %v316_v50 = vpop.f32.mrb[6].mxu0 }
 0x2a6   :  { %v426_v51 = vpop.f32.mrb[7].mxu0  ;;  %v322_v52 = vsel %vm321_vm2, %v314_v48, -inf }
 0x2a7   :  { %323 = vmax.xlane.f32.xlu0 %v322_v52 }
 0x334   :  { %v324_v53 = vpop.xlane.xlu0 %323 }
 0x335   :  { %v325_v54 = vsub.f32 %v322_v52, %v324_v53 }
 0x337   :  { %v326_v55 = vmul.f32 1.442695, %v325_v54 }
 0x339   :  { %450 = vpow2.f32 %v326_v55 }
 0x343   :  { %v451_v56 = vpop.eup %450 }
 0x344   :  { %328 = vadd.xlane.f32.xlu0 %v451_v56 }
 0x3d1   :  { %v329_v57 = vpop.xlane.xlu0 %328 }
 0x3d2   :  { %452 = vrcp.f32 %v329_v57 }
 0x3dc   :  { %v453_v58 = vpop.eup %452 }
 0x3dd   :  { %v331_v59 = vmul.f32 %v453_v58, %v451_v56 }
 0x3df   :  { %333 = vst.msk [vmem:[%s542_s2] sm:$0xff] %vm332_vm3, %v331_v59 }
 0x3e0   :  { %338 = vsyncpa [#allocation3], 1 }

</bundles_post_ra>
